<compile_context>
chip_gen: v6e
topology: v6e:2x2x1
jax: 0.10.0
libtpu: 0.0.40
codegen_flags: <defaults>
</compile_context>

<pallas_src>
import functools

import jax
import jax.numpy as jnp
from jax.experimental import pallas as pl
from jax.experimental.pallas import tpu as pltpu


# --------------------------------------------------------------------------- helpers
def _sublane_quantum(dtype) -> int:
    """Minimum second-to-last-dim multiple for this dtype's VMEM packing."""
    itemsize = jnp.dtype(dtype).itemsize
    return max(8, 32 // max(1, itemsize))


def _pad2(x, q0, q1):
    """Zero-pad a 2-D array up to multiples of (q0, q1). No-op when already aligned."""
    p0 = (-x.shape[0]) % q0
    p1 = (-x.shape[1]) % q1
    if p0 == 0 and p1 == 0:
        return x
    return jnp.pad(x, ((0, p0), (0, p1)))


def _physical_vmem_bytes() -> int:
    """Best-effort per-core physical VMEM; conservative 64 MiB (v7x) fallback."""
    try:
        info = pltpu.get_tpu_info()
        v = getattr(info, "vmem_capacity_bytes", None)
        if v:
            return int(v)
    except Exception:
        pass
    try:
        kind = jax.devices()[0].device_kind.lower()
        if "v5" in kind or "v6" in kind:
            return 128 * 1024 * 1024
    except Exception:
        pass
    return 64 * 1024 * 1024


def _pick_tile(dim, preferred, quanta):
    """Largest tile <= preferred dividing dim, preferring coarser (MXU-friendly) quanta."""
    if dim <= preferred:
        return dim
    for q in quanta:
        start = (min(preferred, dim) // q) * q
        for t in range(start, 0, -q):
            if dim % t == 0:
                return t
    return dim  # unreachable once dims are padded to the finest quantum


def _footprint_bytes(tm, tn, tk, gk):
    """Conservative f32 VMEM footprint: double-buffered inputs + scratch + temporaries."""
    elems = 2 * tm * tn + 2 * tm * tk + 2 * tk * tn   # Y / Db / alpha blocks (2 bufs each)
    elems += 2 * tm * tn                              # matmul result + |diff| temporaries
    if gk > 1:
        elems += tm * tn                              # f32 accumulator scratch
    return 4 * elems + 2 * (8 * 128 * 4)              # + partial-sum output block


def _choose_tiles(Mp, Np, Kp, tm_pref, tn_pref, tk_pref, cap, sub_q):
    """Pick aligned divisor tiles under the VMEM budget; keep >= 2 parallel blocks."""
    budget = int(0.8 * cap)
    while True:
        tm = _pick_tile(Mp, tm_pref, (256, 128, sub_q))
        tn = _pick_tile(Np, tn_pref, (256, 128))
        tk = _pick_tile(Kp, tk_pref, (256, 128))
        gk = Kp // tk
        if _footprint_bytes(tm, tn, tk, gk) <= budget:
            break
        shrinkable = []
        if tn_pref > 128:
            shrinkable.append(("tn", tn_pref))
        if tk_pref > 128:
            shrinkable.append(("tk", tk_pref))
        if tm_pref > sub_q:
            shrinkable.append(("tm", tm_pref))
        if not shrinkable:
            break
        which = max(shrinkable, key=lambda kv: kv[1])[0]
        if which == "tn":
            tn_pref = max(128, tn_pref // 2)
        elif which == "tk":
            tk_pref = max(128, tk_pref // 2)
        else:
            tm_pref = max(sub_q, tm_pref // 2)

    # v7x megacore: keep at least two blocks on the "parallel" i/j axes when possible.
    if (Mp // tm) * (Np // tn) == 1:
        if Mp >= 2 * sub_q:
            tm = _pick_tile(Mp, max(sub_q, tm // 2), (256, 128, sub_q))
        elif Np >= 256:
            tn = _pick_tile(Np, max(128, tn // 2), (256, 128))
    return tm, tn, tk


# --------------------------------------------------------------------------- kernels
def _fold_abs_to_lane_block(d, tm, tn):
    """Reduce a (tm, tn) f32 |diff| tile to a lane-dense (8, 128) partial-sum block.

    The (tm, tn) -> (tm//8, 8, tn) reshape matches the native (8,128) VMEM tiling
    (free); the axis-0 sum and the 128-aligned lane folds are pure VALU adds — no full
    cross-lane XLU reduction and no masked scalar store on the per-tile path.
    """
    p = jnp.sum(d.reshape(tm // 8, 8, tn), axis=0)     # (8, tn)
    blk = p[:, 0:128]
    for c in range(1, tn // 128):                      # static, lane-tile-aligned folds
        blk = blk + p[:, c * 128:(c + 1) * 128]
    return blk


def _loss1_kernel_fullk(y_ref, db_ref, alpha_ref, out_ref, *, tm, tn):
    """K fits in one tile: single matmul per (i, j) block, no accumulator RMW."""
    prod = jnp.dot(db_ref[...], alpha_ref[...], preferred_element_type=jnp.float32)
    d = jnp.abs(y_ref[...].astype(jnp.float32) - prod)
    out_ref[...] = _fold_abs_to_lane_block(d, tm, tn)


def _loss1_kernel_fullk_alpha_resident(y_ref, db_ref, alpha_ref, out_ref, *, tm, tn):
    """K fits in one tile and alpha is fully VMEM-resident: slice its j-th column block."""
    j = pl.program_id(1)
    col = pl.multiple_of(j * tn, 128)
    a = alpha_ref[:, pl.ds(col, tn)]
    prod = jnp.dot(db_ref[...], a, preferred_element_type=jnp.float32)
    d = jnp.abs(y_ref[...].astype(jnp.float32) - prod)
    out_ref[...] = _fold_abs_to_lane_block(d, tm, tn)


def _loss1_kernel_ktiled(y_ref, db_ref, alpha_ref, out_ref, acc_ref, *, tm, tn):
    """General path: grid = (gm, gn, gk), K innermost reduction with f32 accumulator."""
    k = pl.program_id(2)

    @pl.when(k == 0)
    def _():
        acc_ref[...] = jnp.zeros_like(acc_ref)

    acc_ref[...] += jnp.dot(
        db_ref[...], alpha_ref[...], preferred_element_type=jnp.float32
    )

    @pl.when(k == pl.num_programs(2) - 1)
    def _():
        d = jnp.abs(y_ref[...].astype(jnp.float32) - acc_ref[...])
        out_ref[...] = _fold_abs_to_lane_block(d, tm, tn)


# --------------------------------------------------------------------------- wrapper
@functools.partial(
    jax.jit,
    static_argnames=("tm", "tn", "tk", "alpha_resident_max_bytes", "use_bf16_matmul"),
)
def loss1(Y, Db, alpha, *, tm=None, tn=None, tk=None,
          alpha_resident_max_bytes=8 * 1024 * 1024, use_bf16_matmul=False):
    """|| Y - Db @ alpha ||_1 / Y.shape[0].  tm/tn/tk are upper bounds (auto-adjusted)."""
    M, N = Y.shape
    M2, K = Db.shape
    K2, N2 = alpha.shape
    assert M2 == M and K2 == K and N2 == N

    if use_bf16_matmul:
        # Optional: bf16 MXU inputs with f32 accumulation (higher MXU rate, looser numerics).
        Db = Db.astype(jnp.bfloat16)
        alpha = alpha.astype(jnp.bfloat16)

    phys = _physical_vmem_bytes()
    cap = min(100 * 1024 * 1024, int(0.8 * phys))   # scoped-VMEM ceiling with headroom
    big_vmem = phys >= 96 * 1024 * 1024
    tm_pref = tm if tm is not None else (1024 if big_vmem else 512)
    tn_pref = tn if tn is not None else (2048 if big_vmem else 1024)
    tk_pref = tk if tk is not None else 1024

    # Zero-pad to hardware-friendly multiples; padded rows/cols of Y/Db/alpha are zero
    # and contribute exactly 0 to |Y - Db @ alpha|.
    sub_q = max(_sublane_quantum(Y.dtype), _sublane_quantum(Db.dtype))
    Yp = _pad2(Y, sub_q, 128)
    Dbp = _pad2(Db, sub_q, 128)
    alphap = _pad2(alpha, 128, 128)
    Mp, Np = Yp.shape
    Kp = Dbp.shape[1]

    tm_, tn_, tk_ = _choose_tiles(Mp, Np, Kp, tm_pref, tn_pref, tk_pref, cap, sub_q)
    gm, gn, gk = Mp // tm_, Np // tn_, Kp // tk_
    assert gm * tm_ == Mp and gn * tn_ == Np and gk * tk_ == Kp

    out_shape = jax.ShapeDtypeStruct((gm * 8, gn * 128), jnp.float32)
    itemsize = max(Db.dtype.itemsize, alpha.dtype.itemsize)

    if gk == 1:
        base_bytes = 4 * (2 * tm_ * tn_ + 2 * tm_ * tn_) + 2 * itemsize * tm_ * Kp
        alpha_res_bytes = 2 * itemsize * Kp * Np          # worst case: double-buffered
        use_alpha_res = (
            alpha.dtype.itemsize * K * N <= alpha_resident_max_bytes
            and base_bytes + alpha_res_bytes <= int(0.85 * cap)
        )
        if use_alpha_res:
            # Every operand is fetched from HBM exactly once over the whole grid.
            kernel = functools.partial(_loss1_kernel_fullk_alpha_resident, tm=tm_, tn=tn_)
            grid = (gm, gn)
            in_specs = [
                pl.BlockSpec((tm_, tn_), lambda i, j: (i, j)),   # Y: streamed once
                pl.BlockSpec((tm_, Kp), lambda i, j: (i, 0)),    # Db: resident across j
                pl.BlockSpec((Kp, Np), lambda i, j: (0, 0)),     # alpha: grid-resident
            ]
            out_specs = pl.BlockSpec((8, 128), lambda i, j: (i, j))
            est = base_bytes + alpha_res_bytes
        else:
            # Shape-aware grid order: re-stream whichever operand costs less HBM traffic.
            kernel = functools.partial(_loss1_kernel_fullk, tm=tm_, tn=tn_)
            stream_alpha_cost = gm * Np * Kp          # i outer: alpha refetched gm times
            stream_db_cost = gn * Mp * Kp             # j outer: Db refetched gn times
            if stream_db_cost <= stream_alpha_cost:
                grid = (gn, gm)                       # j outer / i inner: alpha resident
                in_specs = [
                    pl.BlockSpec((tm_, tn_), lambda j, i: (i, j)),
                    pl.BlockSpec((tm_, Kp), lambda j, i: (i, 0)),
                    pl.BlockSpec((Kp, tn_), lambda j, i: (0, j)),
                ]
                out_specs = pl.BlockSpec((8, 128), lambda j, i: (i, j))
            else:
                grid = (gm, gn)                       # i outer / j inner: Db resident
                in_specs = [
                    pl.BlockSpec((tm_, tn_), lambda i, j: (i, j)),
                    pl.BlockSpec((tm_, Kp), lambda i, j: (i, 0)),
                    pl.BlockSpec((Kp, tn_), lambda i, j: (0, j)),
                ]
                out_specs = pl.BlockSpec((8, 128), lambda i, j: (i, j))
            est = _footprint_bytes(tm_, tn_, Kp, 1)
        scratch = []
        dims = ("parallel", "parallel")
    else:
        kernel = functools.partial(_loss1_kernel_ktiled, tm=tm_, tn=tn_)
        grid = (gm, gn, gk)
        in_specs = [
            pl.BlockSpec((tm_, tn_), lambda i, j, k: (i, j)),   # Y (resident across k)
            pl.BlockSpec((tm_, tk_), lambda i, j, k: (i, k)),   # Db
            pl.BlockSpec((tk_, tn_), lambda i, j, k: (k, j)),   # alpha
        ]
        out_specs = pl.BlockSpec((8, 128), lambda i, j, k: (i, j))
        scratch = [pltpu.VMEM((tm_, tn_), jnp.float32)]
        dims = ("parallel", "parallel", "arbitrary")
        est = _footprint_bytes(tm_, tn_, tk_, gk)

    vmem_limit = int(min(cap, max(32 * 1024 * 1024, int(1.2 * est) + (2 << 20))))

    partials = pl.pallas_call(
        kernel,
        out_shape=out_shape,
        grid_spec=pltpu.PrefetchScalarGridSpec(
            num_scalar_prefetch=0,
            grid=grid,
            in_specs=in_specs,
            out_specs=out_specs,
            scratch_shapes=scratch,
        ),
        compiler_params=pltpu.CompilerParams(
            dimension_semantics=dims,
            vmem_limit_bytes=vmem_limit,
        ),
    )(Yp, Dbp, alphap)

    # Tiny (gm*8, gn*128) epilogue in plain XLA, then the /M from the module (original M).
    return jnp.sum(partials) / jnp.float32(M)


# --------------------------------------------------------------------------- test
if __name__ == "__main__":
    key = jax.random.PRNGKey(0)
    kY, kD, kA = jax.random.split(key, 3)

    M, K, N = 64, 256, 256  # small, tile-aligned shapes
    Y = jax.random.normal(kY, (M, N), dtype=jnp.float32)
    Db = jax.random.normal(kD, (M, K), dtype=jnp.float32)
    alpha = jax.random.normal(kA, (K, N), dtype=jnp.float32)

    # Pure-JAX reference (same semantics as the PyTorch module), full-precision matmul.
    prod = jnp.matmul(Db, alpha, precision=jax.lax.Precision.HIGHEST)
    ref = jnp.sum(jnp.abs(Y - prod)) / M

    # 1) default config: single-K fast path with fully VMEM-resident alpha.
    out = jax.block_until_ready(loss1(Y, Db, alpha))
    assert jnp.allclose(out, ref, rtol=1e-4, atol=1e-3), (out, ref)

    # 2) small explicit tiles: exercises the K-tiled accumulator path (3-D grid).
    out2 = jax.block_until_ready(loss1(Y, Db, alpha, tm=32, tn=128, tk=128))
    assert jnp.allclose(out2, ref, rtol=1e-4, atol=1e-3), (out2, ref)

    # 3) force the streamed-operand full-K path (shape-aware grid order).
    out3 = jax.block_until_ready(loss1(Y, Db, alpha, alpha_resident_max_bytes=0))
    assert jnp.allclose(out3, ref, rtol=1e-4, atol=1e-3), (out3, ref)

    # 4) non-aligned shapes: exercises the zero-padding path.
    M2_, K2_, N2_ = 50, 200, 130
    Y2 = jax.random.normal(kY, (M2_, N2_), dtype=jnp.float32)
    Db2 = jax.random.normal(kD, (M2_, K2_), dtype=jnp.float32)
    alpha2 = jax.random.normal(kA, (K2_, N2_), dtype=jnp.float32)
    prod2 = jnp.matmul(Db2, alpha2, precision=jax.lax.Precision.HIGHEST)
    ref2 = jnp.sum(jnp.abs(Y2 - prod2)) / M2_
    out4 = jax.block_until_ready(loss1(Y2, Db2, alpha2))
    assert jnp.allclose(out4, ref2, rtol=1e-4, atol=1e-3), (out4, ref2)

    print("KERNEL_OK")
</pallas_src>

<mosaic_0001>
module attributes {stable_mosaic.version = 11 : i64} {
  func.func @_loss1_kernel_fullk_alpha_resident(%arg0: i32, %arg1: i32, %arg2: memref<32x256xf32, #tpu.memory_space<vmem>>, %arg3: memref<32x256xf32, #tpu.memory_space<vmem>>, %arg4: memref<256x256xf32, #tpu.memory_space<vmem>>, %arg5: memref<8x128xf32, #tpu.memory_space<vmem>>) attributes {dimension_semantics = [#tpu.dimension_semantics<parallel>, #tpu.dimension_semantics<parallel>], iteration_bounds = array<i64: 2, 1>, scalar_prefetch = 0 : i64, scratch_operands = 0 : i64, tpu.core_type = #tpu.core_type<tc>, window_params = [{transform_indices = @transform_0, window_bounds = array<i64: 32, 256>}, {transform_indices = @transform_1, window_bounds = array<i64: 32, 256>}, {pipeline_mode = #tpu.pipeline_mode<synchronous>, transform_indices = @transform_2, window_bounds = array<i64: 256, 256>}, {transform_indices = @transform_3, window_bounds = array<i64: 8, 128>}]} {
    %c256_i32 = arith.constant 256 : i32
    %0 = arith.muli %arg1, %c256_i32 : i32
    %1 = tpu.assume_multiple %0, 128 : i32
    %c0 = arith.constant 0 : index
    %2 = arith.index_cast %1 : i32 to index
    %3 = vector.load %arg4[%c0, %2] : memref<256x256xf32, #tpu.memory_space<vmem>>, vector<256x256xf32>
    %c0_0 = arith.constant 0 : index
    %c0_1 = arith.constant 0 : index
    %4 = vector.load %arg3[%c0_0, %c0_1] : memref<32x256xf32, #tpu.memory_space<vmem>>, vector<32x256xf32>
    %cst = arith.constant dense<0.000000e+00> : vector<32x256xf32>
    %5 = tpu.matmul %4, %3, %cst {dimension_numbers = #tpu.dot_dimension_numbers<[1], [0], [0], [1], [0, 0, 1, 1], [], []>} : vector<32x256xf32>, vector<256x256xf32>, vector<32x256xf32> -> vector<32x256xf32>
    %c0_2 = arith.constant 0 : index
    %c0_3 = arith.constant 0 : index
    %6 = vector.load %arg2[%c0_2, %c0_3] : memref<32x256xf32, #tpu.memory_space<vmem>>, vector<32x256xf32>
    %7 = arith.subf %6, %5 : vector<32x256xf32>
    %8 = math.absf %7 : vector<32x256xf32>
    %9 = vector.shape_cast %8 : vector<32x256xf32> to vector<4x8x256xf32>
    %cst_4 = arith.constant dense<0.000000e+00> : vector<8x256xf32>
    %10 = vector.multi_reduction <add>, %9, %cst_4 [0] : vector<4x8x256xf32> to vector<8x256xf32>
    %11 = vector.extract_strided_slice %10 {offsets = [0, 0], sizes = [8, 128], strides = [1, 1]} : vector<8x256xf32> to vector<8x128xf32>
    %12 = vector.extract_strided_slice %10 {offsets = [0, 128], sizes = [8, 128], strides = [1, 1]} : vector<8x256xf32> to vector<8x128xf32>
    %13 = arith.addf %11, %12 : vector<8x128xf32>
    %c0_5 = arith.constant 0 : index
    %c0_6 = arith.constant 0 : index
    %14 = vector.load %arg5[%c0_5, %c0_6] : memref<8x128xf32, #tpu.memory_space<vmem>>, vector<8x128xf32>
    tpu.vector_store %arg5[%c0_5, %c0_6], %13 {strides = array<i32>} : memref<8x128xf32, #tpu.memory_space<vmem>>, vector<8x128xf32>,
    return
  }
  func.func @transform_0(%arg0: i32, %arg1: i32) -> (i32, i32) {
    %c0_i32 = arith.constant 0 : i32
    return %arg0, %arg1 : i32, i32
  }
  func.func @transform_1(%arg0: i32, %arg1: i32) -> (i32, i32) {
    %c0_i32 = arith.constant 0 : i32
    %c0_i32_0 = arith.constant 0 : i32
    return %arg0, %c0_i32 : i32, i32
  }
  func.func @transform_2(%arg0: i32, %arg1: i32) -> (i32, i32) {
    %c0_i32 = arith.constant 0 : i32
    %c0_i32_0 = arith.constant 0 : i32
    %c0_i32_1 = arith.constant 0 : i32
    return %c0_i32, %c0_i32_0 : i32, i32
  }
  func.func @transform_3(%arg0: i32, %arg1: i32) -> (i32, i32) {
    %c0_i32 = arith.constant 0 : i32
    return %arg0, %arg1 : i32, i32
  }
}

</mosaic_0001>

<bundles_post_ra>
// kernel: loss1.1
= control target key start
LH: loop header
LB: loop body
LE: loop exit
PB: predicated region body
PF: predicated region fallthrough
CT: control target
= control target key end

     0   :  { %8 = vsyncpa [#allocation3], 0  ;;  %s1097_s0 = inlined_call_operand.hbm [shape: f32[64,256], index: 0, kind: input, shape index: {}]   ;;  %s1098_s1 = inlined_call_operand.hbm [shape: f32[64,256], index: 1, kind: input, shape index: {}]   ;;  %s1099_s2 = inlined_call_operand.hbm [shape: f32[256,256], index: 2, kind: input, shape index: {}]   ;;  %s1100_s3 = inlined_call_operand.vmem [shape: f32[16,128], index: 3, kind: output, shape index: {}]  }
   0x1   :  { %10 = vsyncpa [#allocation3 + $0x1], 0 }
   0x2   :  { %11 = vsyncpa [#allocation5], 0 }
   0x3   :  { %13 = vsyncpa [#allocation5 + $0x1], 0  ;;  %s918_s12 = smov 0   ;;  %s920_s13 = smov 0  }
   0x4   :  { %s922_s14 = smov 0   ;;  %s924_s15 = smov 0  }
   0x5   :  { %s926_s16 = smov 0   ;;  %s928_s17 = smov 0  }
   0x6 LB: > { %s590_s18 = sadd.s32 4294967295, %s891_s17   ;;  %p53_p0 = scmp.ne.s32.totalorder %s875_s13, %s871_s12  ;;  %s891_s17 = sphi %s928_s17, %s19_s17   ;;  %s887_s16 = sphi %s926_s16, %s1110_s16   ;;  %s883_s15 = sphi %s924_s15, %s1109_s15   ;;  %s879_s14 = sphi %s922_s14, %s1108_s14   ;;  %s875_s13 = sphi %s920_s13, %s1107_s13   ;;  %s871_s12 = sphi %s918_s12, %s1106_s12  }
   0x7   : > { %p950_p1 = scmp.eq.s32.totalorder %s590_s18, 0  ;;  %p592_p2 = scmp.ge.s32.totalorder %s891_s17, 1 }
   0x8   : > { %p139_p3 = scmp.lt.s32.totalorder %s891_s17, 3  ;;  %s893_s22 = smov [#allocation6]  }
   0x9   : > { %p958_p4 = por %p950_p1, %p53_p0  ;;  %s151_s23 = sshll.u32 %s893_s22, 4  ;;  %s152_s23 = int_to_ptr.vmem [resolvable:$true] %s151_s23 }
   0xa   : > { %p962_p5 = pnand %p592_p2, %p139_p3  ;;  %s31_s25 = sadd.s32 1, %s887_s16 }
   0xb   : > { %s762_s26 = scalar_lea.vmem %s152_s23, 8192  ;;  %p770_p12 = scmp.lt.s32.totalorder %s152_s23, %s152_s23 }
   0xc   : > { %p686_p6 = pneg %p962_p5  ;;  %p763_p9 = scmp.ne.s32.totalorder %s152_s23, %s762_s26 }
   0xd   : > { %p771_p13 = scmp.lt.s32.totalorder %s762_s26, %s762_s26 }
   0xe   : > { %p970_p7 = pnand %p686_p6, %p950_p1 }
   0xf   : > { %p772_p0 = por %p771_p13, %p770_p12 }
  0x10   : > { %p753_p8 = pneg %p970_p7 }
  0x12   : > { %p765_p10 = pnand %p763_p9, %p753_p8 }
  0x14   : > { %p766_p11 = pneg %p765_p10 }
  0x16   : > { %p773_p2 = pnand %p772_p0, %p766_p11 }
  0x18   : > { %776 = shalt.err (!%p773_p2)
}
  0x19   : > { %s894_s27 = smov 256   ;;  %s895_s28 = smov 16  }
  0x1a   : > { %689 = dma.hbm_to_vmem [thread:$0]  (!%p970_p7), %s1099_s2, 8192, %s152_s23, [#allocation5], %s894_s27, %s894_s27, %s895_s28  }
  0x1b   : > { %p33_p3 = scmp.ge.s32.totalorder %s31_s25, 2  ;;  %s40_s4 = sadd.s32 1, %s879_s14 }
  0x1c   : > { %p47_p6 = scmp.ne.s32.totalorder %s879_s14, %s875_s13  ;;  %p48_p8 = scmp.eq.s32.totalorder %s891_s17, 0 }
  0x1d   : > { %s1112_s25 = smov (%p33_p3, %s31_s25), 0  ;;  %p698_p10 = scmp.lt.s32.totalorder %s891_s17, 2 }
  0x1e   : > { %p49_p9 = por %p48_p8, %p47_p6  ;;  %s35_s5 = ssub.s32 %s887_s16, %s1112_s25 }
  0x1f   : > { %s165_s6 = sand.u32 1, %s879_s14   ;;  %p38_p11 = scmp.eq.s32.totalorder %s35_s5, 0 }
  0x20   : > { %s995_s7 = sshll.u32 %s165_s6, 6  ;;  %s611_s8 = sshll.u32 %s887_s16, 10 }
  0x21   : > { %s999_s9 = scalar_select %p38_p11, %s879_s14, %s40_s4  }
  0x22   : > { %s178_s12 = scalar_lea.hbm %s1097_s0, %s611_s8  ;;  %s169_s22 = scalar_lea.vmem [#allocation2], %s995_s7 }
  0x23   : > { %s179_s23 = sshll.u32 %s169_s22, 4  ;;  %p1005_p7 = pnand %p698_p10, %p49_p9  ;;  %s180_s23 = int_to_ptr.vmem [resolvable:$true] %s179_s23 }
  0x24   : > { %s1012_s30 = scalar_lea.hbm %s1098_s1, %s611_s8  ;;  %s166_s4 = scalar_lea.sflag [#allocation3], %s165_s6 }
  0x25   : > { %p779_p12 = pneg %p1005_p7  ;;  %s790_s5 = scalar_lea.vmem %s180_s23, 1024 }
  0x26   : > { %p791_p13 = scmp.ne.s32.totalorder %s180_s23, %s790_s5  ;;  %s896_s10 = smov [#allocation2]  }
  0x27   : > { %s795_s11 = sshll.u32 %s896_s10, 4  ;;  %s796_s11 = int_to_ptr.vmem [resolvable:$false] %s795_s11 }
  0x28   : > { %p793_p0 = pnand %p791_p13, %p779_p12  ;;  %s797_s22 = scalar_lea.vmem %s796_s11, 2048 }
  0x29   : > { %p798_p3 = scmp.lt.s32.totalorder %s180_s23, %s796_s11  ;;  %p799_p6 = scmp.lt.s32.totalorder %s797_s22, %s790_s5 }
  0x2a   : > { %p794_p2 = pneg %p793_p0 }
  0x2b   : > { %p800_p8 = por %p799_p6, %p798_p3 }
  0x2d   : > { %p801_p9 = pnand %p800_p8, %p794_p2 }
  0x2f   : > { %804 = shalt.err (!%p801_p9)
}
  0x30   : > { %693 = dma.hbm_to_vmem [thread:$0]  (!%p1005_p7), %s178_s12, 1024, %s180_s23, %s166_s4, %s894_s27, %s894_s27, %s895_s28  }
  0x31   : > { %s193_s6 = scalar_lea.vmem [#allocation4], %s995_s7  ;;  %s189_s26 = sand.u32 1, %s891_s17  }
  0x32   : > { %s201_s8 = sshll.u32 %s193_s6, 4  ;;  %s190_s29 = scalar_lea.sflag [#allocation5], %s189_s26  ;;  %s202_s8 = int_to_ptr.vmem [resolvable:$true] %s201_s8 }
  0x33   : > { %s818_s10 = scalar_lea.vmem %s202_s8, 1024  ;;  %s897_s5 = smov [#allocation4]  }
  0x34   : > { %p819_p10 = scmp.ne.s32.totalorder %s202_s8, %s818_s10  ;;  %s823_s11 = sshll.u32 %s897_s5, 4  ;;  %s824_s11 = int_to_ptr.vmem [resolvable:$false] %s823_s11 }
  0x35   : > { %s825_s22 = scalar_lea.vmem %s824_s11, 2048  ;;  %p826_p0 = scmp.lt.s32.totalorder %s202_s8, %s824_s11 }
  0x36   : > { %p821_p11 = pnand %p819_p10, %p779_p12  ;;  %p827_p2 = scmp.lt.s32.totalorder %s825_s22, %s818_s10 }
  0x38   : > { %p822_p13 = pneg %p821_p11  ;;  %p828_p3 = por %p827_p2, %p826_p0 }
  0x3a   : > { %p829_p6 = pnand %p828_p3, %p822_p13 }
  0x3c   : > { %832 = shalt.err (!%p829_p6)
}
  0x3d   : > { %696 = dma.hbm_to_vmem [thread:$0]  (!%p1005_p7), %s1012_s30, 1024, %s202_s8, %s190_s29, %s894_s27, %s894_s27, %s895_s28  }
  0x3e   : > { %213 = sbr.rel (%p962_p5) target bundleno = 350 (0x15e), region = 32  ;;  %s215_s7 = sand.u32 (!%p962_p5), 1, %s875_s13  }
  0x3f   : > { %s604_s12 = sshll.u32 (!%p962_p5), %s215_s7, 6  ;;  %s216_s23 = scalar_lea.sflag (!%p962_p5), [#allocation3], %s215_s7 }
  0x40   : > { %s1038_s4 = scalar_lea.vmem (!%p962_p5), [#allocation2], %s604_s12 }
  0x43   : > { %858 = dma.done.wait (%p958_p4), %s216_s23, 1024  }
  0x44   : > { %860 = vsyncadd (%p958_p4), %s216_s23, 4294966272  ;;  %s224_s24 = sand.u32 1, %s590_s18   ;;  %s1046_s28 = scalar_lea.vmem [#allocation4], %s604_s12 }
  0x45   : > { %s225_s27 = scalar_lea.sflag [#allocation5], %s224_s24 }
  0x46   : > { %862 = dma.done.wait (%p958_p4), %s225_s27, 1024  }
  0x47   : > { %864 = vsyncadd (%p958_p4), %s225_s27, 4294966272 }
  0x48   : > { %866 = dma.done.wait (%p950_p1), [#allocation5], 8192  }
  0x49   : > { %868 = vsyncadd (%p950_p1), [#allocation5], 4294959104  ;;  %v308_v0 = vld [vmem:[#allocation6 + $0xf8] sm:$0xff]  ;;  %v307_v1 = vld [vmem:[#allocation6 + $0xf0] sm:$0xff]  ;;  %p265_p1 = scmp.lt.s32.totalorder %s883_s15, 1 }
  0x4a   : > { %v306_v2 = vld [vmem:[#allocation6 + $0xe8] sm:$0xff]  ;;  %349 = vmatprep.subr.mxu0 %v308_v0  ;;  %614 = vmatprep.subr.mxu1 %v308_v0  ;;  %v305_v3 = vld [vmem:[#allocation6 + $0xe0] sm:$0xff]  ;;  %v304_v4 = vld [vmem:[#allocation6 + $0xd8] sm:$0xff] }
  0x4b   : > { %350 = vmatpush1.msra.mxu0 %v307_v1  ;;  %646 = vmatpush1.msra.mxu1 %v307_v1  ;;  %v303_v5 = vld [vmem:[#allocation6 + $0xd0] sm:$0xff]  ;;  %v302_v6 = vld [vmem:[#allocation6 + $0xc8] sm:$0xff]  ;;  %v301_v7 = vld [vmem:[#allocation6 + $0xc0] sm:$0xff]  ;;  %s1114_s15 = smov (!%p265_p1, %s883_s15), 1 }
  0x4c   : > { %351 = vmatprep.subr.mxu0 %v306_v2  ;;  %615 = vmatprep.subr.mxu1 %v306_v2  ;;  %v300_v8 = vld [vmem:[#allocation6 + $0xb8] sm:$0xff]  ;;  %v299_v9 = vld [vmem:[#allocation6 + $0xb0] sm:$0xff]  ;;  %v298_v10 = vld [vmem:[#allocation6 + $0xa8] sm:$0xff]  ;;  %s607_s18 = sshll.u32 %s1114_s15, 3 }
  0x4d   : > { %352 = vmatpush1.msra.mxu0 %v305_v3  ;;  %647 = vmatpush1.msra.mxu1 %v305_v3  ;;  %v297_v11 = vld [vmem:[#allocation6 + $0xa0] sm:$0xff]  ;;  %v296_v12 = vld [vmem:[#allocation6 + $0x98] sm:$0xff]  ;;  %v295_v13 = vld [vmem:[#allocation6 + $0x90] sm:$0xff]  ;;  %s271_s21 = scalar_lea.vmem %s1100_s3, %s607_s18 }
  0x4e   : > { %353 = vmatprep.subr.mxu0 %v304_v4  ;;  %616 = vmatprep.subr.mxu1 %v304_v4  ;;  %v294_v14 = vld [vmem:[#allocation6 + $0x88] sm:$0xff]  ;;  %v293_v15 = vld [vmem:[#allocation6 + $0x80] sm:$0xff]  ;;  %v292_v16 = vld [vmem:[#allocation6 + $0x78] sm:$0xff] }
  0x4f   : > { %354 = vmatpush1.msra.mxu0 %v303_v5  ;;  %648 = vmatpush1.msra.mxu1 %v303_v5  ;;  %v291_v17 = vld [vmem:[#allocation6 + $0x70] sm:$0xff]  ;;  %v290_v18 = vld [vmem:[#allocation6 + $0x68] sm:$0xff]  ;;  %v289_v19 = vld [vmem:[#allocation6 + $0x60] sm:$0xff] }
  0x50   : > { %355 = vmatprep.subr.mxu0 %v302_v6  ;;  %617 = vmatprep.subr.mxu1 %v302_v6  ;;  %v288_v20 = vld [vmem:[#allocation6 + $0x58] sm:$0xff]  ;;  %v287_v21 = vld [vmem:[#allocation6 + $0x50] sm:$0xff]  ;;  %v286_v22 = vld [vmem:[#allocation6 + $0x48] sm:$0xff] }
  0x51   : > { %356 = vmatpush1.msra.mxu0 %v301_v7  ;;  %649 = vmatpush1.msra.mxu1 %v301_v7  ;;  %v285_v23 = vld [vmem:[#allocation6 + $0x40] sm:$0xff]  ;;  %v284_v24 = vld [vmem:[#allocation6 + $0x38] sm:$0xff]  ;;  %v283_v25 = vld [vmem:[#allocation6 + $0x30] sm:$0xff] }
  0x52   : > { %357 = vmatprep.subr.mxu0 %v300_v8  ;;  %618 = vmatprep.subr.mxu1 %v300_v8  ;;  %v282_v26 = vld [vmem:[#allocation6 + $0x28] sm:$0xff]  ;;  %v281_v27 = vld [vmem:[#allocation6 + $0x20] sm:$0xff]  ;;  %v280_v28 = vld [vmem:[#allocation6 + $0x18] sm:$0xff] }
  0x53   : > { %358 = vmatpush1.msra.mxu0 %v299_v9  ;;  %650 = vmatpush1.msra.mxu1 %v299_v9  ;;  %v279_v29 = vld [vmem:[#allocation6 + $0x10] sm:$0xff]  ;;  %v278_v30 = vld [vmem:[#allocation6 + $0x8] sm:$0xff]  ;;  %v277_v31 = vld [vmem:[#allocation6] sm:$0xff] }
  0x54   : > { %359 = vmatprep.subr.mxu0 %v298_v10  ;;  %619 = vmatprep.subr.mxu1 %v298_v10  ;;  %v340_v32 = vld [vmem:[#allocation6 + $0x1f8] sm:$0xff]  ;;  %v339_v33 = vld [vmem:[#allocation6 + $0x1f0] sm:$0xff]  ;;  %v338_v34 = vld [vmem:[#allocation6 + $0x1e8] sm:$0xff] }
  0x55   : > { %360 = vmatpush1.msra.mxu0 %v297_v11  ;;  %651 = vmatpush1.msra.mxu1 %v297_v11  ;;  %v337_v35 = vld [vmem:[#allocation6 + $0x1e0] sm:$0xff]  ;;  %v336_v36 = vld [vmem:[#allocation6 + $0x1d8] sm:$0xff]  ;;  %v335_v37 = vld [vmem:[#allocation6 + $0x1d0] sm:$0xff] }
  0x56   : > { %361 = vmatprep.subr.mxu0 %v296_v12  ;;  %620 = vmatprep.subr.mxu1 %v296_v12  ;;  %v334_v38 = vld [vmem:[#allocation6 + $0x1c8] sm:$0xff]  ;;  %v333_v39 = vld [vmem:[#allocation6 + $0x1c0] sm:$0xff]  ;;  %v332_v40 = vld [vmem:[#allocation6 + $0x1b8] sm:$0xff] }
  0x57   : > { %362 = vmatpush1.msra.mxu0 %v295_v13  ;;  %652 = vmatpush1.msra.mxu1 %v295_v13  ;;  %v331_v41 = vld [vmem:[#allocation6 + $0x1b0] sm:$0xff]  ;;  %v330_v42 = vld [vmem:[#allocation6 + $0x1a8] sm:$0xff]  ;;  %v329_v43 = vld [vmem:[#allocation6 + $0x1a0] sm:$0xff] }
  0x58   : > { %363 = vmatprep.subr.mxu0 %v294_v14  ;;  %621 = vmatprep.subr.mxu1 %v294_v14  ;;  %v328_v44 = vld [vmem:[#allocation6 + $0x198] sm:$0xff]  ;;  %v327_v45 = vld [vmem:[#allocation6 + $0x190] sm:$0xff]  ;;  %v326_v46 = vld [vmem:[#allocation6 + $0x188] sm:$0xff] }
  0x59   : > { %364 = vmatpush1.msra.mxu0 %v293_v15  ;;  %653 = vmatpush1.msra.mxu1 %v293_v15  ;;  %v325_v47 = vld [vmem:[#allocation6 + $0x180] sm:$0xff]  ;;  %v324_v48 = vld [vmem:[#allocation6 + $0x178] sm:$0xff]  ;;  %v323_v49 = vld [vmem:[#allocation6 + $0x170] sm:$0xff] }
  0x5a   : > { %365 = vmatprep.subr.mxu0 %v292_v16  ;;  %622 = vmatprep.subr.mxu1 %v292_v16  ;;  %v322_v50 = vld [vmem:[#allocation6 + $0x168] sm:$0xff]  ;;  %v321_v51 = vld [vmem:[#allocation6 + $0x160] sm:$0xff]  ;;  %v320_v52 = vld [vmem:[#allocation6 + $0x158] sm:$0xff] }
  0x5b   : > { %366 = vmatpush1.msra.mxu0 %v291_v17  ;;  %654 = vmatpush1.msra.mxu1 %v291_v17  ;;  %v319_v53 = vld [vmem:[#allocation6 + $0x150] sm:$0xff]  ;;  %v318_v54 = vld [vmem:[#allocation6 + $0x148] sm:$0xff]  ;;  %v317_v55 = vld [vmem:[#allocation6 + $0x140] sm:$0xff] }
  0x5c   : > { %367 = vmatprep.subr.mxu0 %v290_v18  ;;  %623 = vmatprep.subr.mxu1 %v290_v18  ;;  %v316_v56 = vld [vmem:[#allocation6 + $0x138] sm:$0xff]  ;;  %v315_v57 = vld [vmem:[#allocation6 + $0x130] sm:$0xff]  ;;  %v314_v58 = vld [vmem:[#allocation6 + $0x128] sm:$0xff] }
  0x5d   : > { %368 = vmatpush1.msra.mxu0 %v289_v19  ;;  %655 = vmatpush1.msra.mxu1 %v289_v19  ;;  %v313_v59 = vld [vmem:[#allocation6 + $0x120] sm:$0xff]  ;;  %v312_v60 = vld [vmem:[#allocation6 + $0x118] sm:$0xff]  ;;  %v311_v61 = vld [vmem:[#allocation6 + $0x110] sm:$0xff] }
  0x5e   : > { %369 = vmatprep.subr.mxu0 %v288_v20  ;;  %624 = vmatprep.subr.mxu1 %v288_v20  ;;  %v310_v62 = vld [vmem:[#allocation6 + $0x108] sm:$0xff]  ;;  %v309_v0 = vld [vmem:[#allocation6 + $0x100] sm:$0xff]  ;;  %v344_v3 = vld [vmem:[%s1046_s28 + $0x18] sm:$0xff] }
  0x5f   : > { %370 = vmatpush1.msra.mxu0 %v287_v21  ;;  %656 = vmatpush1.msra.mxu1 %v287_v21  ;;  %v342_v63 = vld [vmem:[%s1046_s28 + $0x8] sm:$0xff]  ;;  %v341_v1 = vld [vmem:[%s1046_s28] sm:$0xff]  ;;  %v348_v5 = vld [vmem:[%s1046_s28 + $0x38] sm:$0xff] }
  0x60   : > { %371 = vmatprep.subr.mxu0 %v286_v22  ;;  %625 = vmatprep.subr.mxu1 %v286_v22  ;;  %v346_v2 = vld [vmem:[%s1046_s28 + $0x28] sm:$0xff]  ;;  %v345_v4 = vld [vmem:[%s1046_s28 + $0x20] sm:$0xff]  ;;  %v343_v6 = vld [vmem:[%s1046_s28 + $0x10] sm:$0xff] }
  0x61   : > { %372 = vmatpush1.msra.mxu0 %v285_v23  ;;  %657 = vmatpush1.msra.mxu1 %v285_v23  ;;  %v347_v7 = vld [vmem:[%s1046_s28 + $0x30] sm:$0xff]  ;;  %v438_v8 = vld [vmem:[%s1038_s4] sm:$0xff]  ;;  %v439_v10 = vld [vmem:[%s1038_s4 + $0x8] sm:$0xff] }
  0x62   : > { %373 = vmatprep.subr.mxu0 %v284_v24  ;;  %626 = vmatprep.subr.mxu1 %v284_v24  ;;  %v442_v14 = vld [vmem:[%s1038_s4 + $0x20] sm:$0xff]  ;;  %v440_v15 = vld [vmem:[%s1038_s4 + $0x10] sm:$0xff]  ;;  %v443_v19 = vld [vmem:[%s1038_s4 + $0x28] sm:$0xff] }
  0x63   : > { %374 = vmatpush1.msra.mxu0 %v283_v25  ;;  %658 = vmatpush1.msra.mxu1 %v283_v25  ;;  %v441_v20 = vld [vmem:[%s1038_s4 + $0x18] sm:$0xff]  ;;  %v444_v21 = vld [vmem:[%s1038_s4 + $0x30] sm:$0xff] }
  0x64   : > { %375 = vmatprep.subr.mxu0 %v282_v26  ;;  %627 = vmatprep.subr.mxu1 %v282_v26 }
  0x65   : > { %376 = vmatpush1.msra.mxu0 %v281_v27  ;;  %659 = vmatpush1.msra.mxu1 %v281_v27  ;;  %v445_v27 = vld [vmem:[%s1038_s4 + $0x38] sm:$0xff] }
  0x66   : > { %377 = vmatprep.subr.mxu0 %v280_v28  ;;  %628 = vmatprep.subr.mxu1 %v280_v28 }
  0x67   : > { %378 = vmatpush1.msra.mxu0 %v279_v29  ;;  %660 = vmatpush1.msra.mxu1 %v279_v29 }
  0x68   : > { %379 = vmatprep.subr.mxu0 %v278_v30  ;;  %629 = vmatprep.subr.mxu1 %v278_v30 }
  0x69   : > { %380 = vmatpush1.msra.mxu0 %v277_v31  ;;  %661 = vmatpush1.msra.mxu1 %v277_v31 }
  0x6a   : > { %381 = vmatprep.subr.mxu0 %v340_v32  ;;  %630 = vmatprep.subr.mxu1 %v340_v32 }
  0x6b   : > { %382 = vmatpush2.msra.mxu0 %v339_v33  ;;  %662 = vmatpush2.msra.mxu1 %v339_v33 }
  0x6c   : > { %383 = vmatprep.subr.mxu0 %v338_v34  ;;  %631 = vmatprep.subr.mxu1 %v338_v34 }
  0x6d   : > { %384 = vmatpush2.msra.mxu0 %v337_v35  ;;  %663 = vmatpush2.msra.mxu1 %v337_v35 }
  0x6e   : > { %385 = vmatprep.subr.mxu0 %v336_v36  ;;  %632 = vmatprep.subr.mxu1 %v336_v36 }
  0x6f   : > { %386 = vmatpush2.msra.mxu0 %v335_v37  ;;  %664 = vmatpush2.msra.mxu1 %v335_v37 }
  0x70   : > { %387 = vmatprep.subr.mxu0 %v334_v38  ;;  %633 = vmatprep.subr.mxu1 %v334_v38 }
  0x71   : > { %388 = vmatpush2.msra.mxu0 %v333_v39  ;;  %665 = vmatpush2.msra.mxu1 %v333_v39 }
  0x72   : > { %389 = vmatprep.subr.mxu0 %v332_v40  ;;  %634 = vmatprep.subr.mxu1 %v332_v40 }
  0x73   : > { %390 = vmatpush2.msra.mxu0 %v331_v41  ;;  %666 = vmatpush2.msra.mxu1 %v331_v41 }
  0x74   : > { %391 = vmatprep.subr.mxu0 %v330_v42  ;;  %635 = vmatprep.subr.mxu1 %v330_v42 }
  0x75   : > { %392 = vmatpush2.msra.mxu0 %v329_v43  ;;  %667 = vmatpush2.msra.mxu1 %v329_v43 }
  0x76   : > { %393 = vmatprep.subr.mxu0 %v328_v44  ;;  %636 = vmatprep.subr.mxu1 %v328_v44 }
  0x77   : > { %394 = vmatpush2.msra.mxu0 %v327_v45  ;;  %668 = vmatpush2.msra.mxu1 %v327_v45 }
  0x78   : > { %395 = vmatprep.subr.mxu0 %v326_v46  ;;  %637 = vmatprep.subr.mxu1 %v326_v46 }
  0x79   : > { %396 = vmatpush2.msra.mxu0 %v325_v47  ;;  %669 = vmatpush2.msra.mxu1 %v325_v47 }
  0x7a   : > { %397 = vmatprep.subr.mxu0 %v324_v48  ;;  %638 = vmatprep.subr.mxu1 %v324_v48 }
  0x7b   : > { %398 = vmatpush2.msra.mxu0 %v323_v49  ;;  %670 = vmatpush2.msra.mxu1 %v323_v49 }
  0x7c   : > { %399 = vmatprep.subr.mxu0 %v322_v50  ;;  %639 = vmatprep.subr.mxu1 %v322_v50 }
  0x7d   : > { %400 = vmatpush2.msra.mxu0 %v321_v51  ;;  %671 = vmatpush2.msra.mxu1 %v321_v51 }
  0x7e   : > { %401 = vmatprep.subr.mxu0 %v320_v52  ;;  %640 = vmatprep.subr.mxu1 %v320_v52 }
  0x7f   : > { %402 = vmatpush2.msra.mxu0 %v319_v53  ;;  %672 = vmatpush2.msra.mxu1 %v319_v53 }
  0x80   : > { %403 = vmatprep.subr.mxu0 %v318_v54  ;;  %641 = vmatprep.subr.mxu1 %v318_v54 }
  0x81   : > { %404 = vmatpush2.msra.mxu0 %v317_v55  ;;  %673 = vmatpush2.msra.mxu1 %v317_v55 }
  0x82   : > { %405 = vmatprep.subr.mxu0 %v316_v56  ;;  %642 = vmatprep.subr.mxu1 %v316_v56 }
  0x83   : > { %406 = vmatpush2.msra.mxu0 %v315_v57  ;;  %674 = vmatpush2.msra.mxu1 %v315_v57 }
  0x84   : > { %407 = vmatprep.subr.mxu0 %v314_v58  ;;  %643 = vmatprep.subr.mxu1 %v314_v58 }
  0x85   : > { %408 = vmatpush2.msra.mxu0 %v313_v59  ;;  %675 = vmatpush2.msra.mxu1 %v313_v59 }
  0x86   : > { %409 = vmatprep.subr.mxu0 %v312_v60  ;;  %644 = vmatprep.subr.mxu1 %v312_v60 }
  0x87   : > { %410 = vmatpush2.msra.mxu0 %v311_v61  ;;  %676 = vmatpush2.msra.mxu1 %v311_v61 }
  0x88   : > { %411 = vmatprep.subr.mxu0 %v310_v62  ;;  %413 = vmatprep.mubr.f32.mxu0 %v342_v63 }
  0x89   : > { %412 = vmatpush2.msra.mxu0 %v309_v0  ;;  %645 = vmatprep.subr.mxu1 %v310_v62 }
  0x8a   : > { %414 = vmatmul.mubr.f32.vlgmr.msra.gmra.mxu0 %v341_v1  ;;  %677 = vmatpush2.msra.mxu1 %v309_v0 }
  0x8b   : > { %425 = vmatprep.mubr.f32.mxu1 %v346_v2  ;;  %419 = vmatprep.mubr.f32.mxu0 %v344_v3 }
  0x8c   : > { %426 = vmatmul.mubr.f32.vlgmr.msra.gmra.mxu1 %v345_v4 }
  0x8d   : > { %431 = vmatprep.mubr.f32.mxu1 %v348_v5 }
  0x8e   : > { %420 = vmatmul.mubr.f32.gmra.mxu0 %v343_v6 }
  0x90   : > { %432 = vmatmul.mubr.f32.gmra.mxu1 %v347_v7 }
 0x14a   : > { %v415_v9 = vpop.f32.mrf.mxu0 }
 0x14b   : > { %v446_v11 = vsub.f32 %v438_v8, %v415_v9 }
 0x14c   : > { %v417_v12 = vpop.f32.mrf.mxu0  ;;  %v427_v13 = vpop.f32.mrf.mxu1 }
 0x14d   : > { %v447_v16 = vsub.f32 %v439_v10, %v417_v12  ;;  %v450_v22 = vsub.f32 %v442_v14, %v427_v13  ;;  %v454_v24 = vand.u32 2147483647, %v446_v11 }
 0x14e   : > { %v421_v17 = vpop.f32.mrf.mxu0  ;;  %v429_v18 = vpop.f32.mrf.mxu1 }
 0x14f   : > { %v448_v23 = vsub.f32 %v440_v15, %v421_v17  ;;  %v451_v29 = vsub.f32 %v443_v19, %v429_v18  ;;  %v455_v32 = vand.u32 2147483647, %v447_v16  ;;  %v458_v34 = vand.u32 2147483647, %v450_v22 }
 0x150   : > { %v423_v25 = vpop.f32.mrf.mxu0  ;;  %v433_v26 = vpop.f32.mrf.mxu1 }
 0x151   : > { %v456_v28 = vand.u32 2147483647, %v448_v23  ;;  %v449_v30 = vsub.f32 %v441_v20, %v423_v25  ;;  %v452_v31 = vsub.f32 %v444_v21, %v433_v26  ;;  %v459_v38 = vand.u32 2147483647, %v451_v29 }
 0x152   : > { %v435_v33 = vpop.f32.mrf.mxu1 }
 0x153   : > { %v462_v35 = vadd.f32 %v456_v28, %v454_v24  ;;  %v457_v36 = vand.u32 2147483647, %v449_v30  ;;  %v453_v37 = vsub.f32 %v445_v27, %v435_v33  ;;  %v460_v40 = vand.u32 2147483647, %v452_v31 }
 0x155   : > { %v465_v39 = vadd.f32 %v457_v36, %v455_v32  ;;  %v463_v41 = vadd.f32 %v462_v35, %v458_v34  ;;  %v461_v42 = vand.u32 2147483647, %v453_v37 }
 0x157   : > { %v466_v43 = vadd.f32 %v465_v39, %v459_v38  ;;  %v464_v44 = vadd.f32 %v463_v41, %v460_v40 }
 0x159   : > { %v467_v45 = vadd.f32 %v466_v43, %v461_v42 }
 0x15b   : > { %v468_v46 = vadd.f32 %v467_v45, %v464_v44 }
 0x15d   : > { %469 = vst [vmem:[%s271_s21] sm:$0xff] %v468_v46 }
 0x15e PF: > { %s19_s17 = sadd.s32 1, %s891_s17   ;;  %s1106_s12 = smov %s875_s13 }
 0x15f   : > { %p16_p4 = scmp.ge.s32.totalorder %s19_s17, 4   ;;  %s1107_s13 = smov %s879_s14 }
 0x160   : > { %s1108_s14 = smov %s999_s9  ;;  %s1109_s15 = smov %s887_s16 }
 0x161   : > { %s1110_s16 = smov %s1112_s25  ;;  %18 = sbr.rel (!%p16_p4) target bundleno = 6 (0x6), region = 90 }
 0x166   :  { %495 = vsyncpa [#allocation3], 1 }
 0x167   :  { %497 = vsyncpa [#allocation3 + $0x1], 1 }
 0x168   :  { %498 = vsyncpa [#allocation5], 1 }
 0x169   :  { %500 = vsyncpa [#allocation5 + $0x1], 1 }

</bundles_post_ra>
